<compile_context>
chip_gen: v6e
topology: v6e:2x2x1
jax: 0.10.0
libtpu: 0.0.40
codegen_flags: <defaults>
</compile_context>

<pallas_src>
import functools

import jax
import jax.numpy as jnp
from jax.experimental import pallas as pl
from jax.experimental.pallas import tpu as pltpu


# ---------------------------------------------------------------------------
# Kernels
# ---------------------------------------------------------------------------

def _se_fused_kernel(x_ref, w1_ref, w2_ref, o_ref):
    """Single-pass SE: BT batch elements per grid step.

    x_ref/o_ref: (BT, rows, lanes); w1_ref: (lanes, H) pre-tiled/padded and
    pre-scaled by 1/N; w2_ref: (H, lanes) pre-tiled/padded.
    """
    x = x_ref[...]
    # Squeeze: token sum per batch element, accumulated in f32 (the 1/N of the
    # mean is folded into w1 by the wrapper).
    col = jnp.sum(x, axis=1, dtype=jnp.float32)                              # (BT, lanes)
    # Excite: tiny MLP (MXU; latency hidden under the input/output DMA).
    h = jnp.maximum(
        jnp.dot(col, w1_ref[...], preferred_element_type=jnp.float32), 0.0)  # (BT, H)
    gate = jax.nn.sigmoid(
        jnp.dot(h, w2_ref[...], preferred_element_type=jnp.float32))         # (BT, lanes)
    # Scale in the input dtype; lanes % 128 == 0 -> dense, unmasked stores.
    o_ref[...] = x * gate[:, None, :].astype(o_ref.dtype)


def _se_gate_kernel(x_ref, w1_ref, w2_ref, g_ref, acc_ref, *, total_rows, row_tile):
    """Two-pass fallback, pass 1: accumulate channel sums over row tiles and
    emit the per-batch gate.  x_ref: (row_tile, lanes) (batch dim squeezed)."""
    r = pl.program_id(1)

    @pl.when(r == 0)
    def _():
        acc_ref[...] = jnp.zeros_like(acc_ref)

    x = x_ref[...]
    if total_rows % row_tile != 0:
        # Mask garbage rows of the partial boundary block out of the sum.
        row_idx = r * row_tile + jax.lax.broadcasted_iota(jnp.int32, x.shape, 0)
        x = jnp.where(row_idx < total_rows, x, jnp.zeros_like(x))
    acc_ref[...] += jnp.sum(x, axis=0, keepdims=True, dtype=jnp.float32)

    @pl.when(r == pl.num_programs(1) - 1)
    def _():
        h = jnp.maximum(
            jnp.dot(acc_ref[...], w1_ref[...], preferred_element_type=jnp.float32), 0.0)
        g_ref[...] = jax.nn.sigmoid(
            jnp.dot(h, w2_ref[...], preferred_element_type=jnp.float32))


def _se_scale_kernel(x_ref, g_ref, o_ref):
    """Two-pass fallback, pass 2: apply the gate to each row tile."""
    o_ref[...] = x_ref[...] * g_ref[...].astype(o_ref.dtype)


# ---------------------------------------------------------------------------
# Wrapper helpers
# ---------------------------------------------------------------------------

def _vmem_capacity_bytes():
    try:
        return int(pltpu.get_tpu_info().vmem_capacity_bytes)
    except Exception:
        return 64 * 1024 * 1024  # conservative: v7x per-TensorCore VMEM


def _vmem_limit(step_bytes, vmem_cap):
    # Always request enough for the pipelined working set (fixes v5e's 16 MiB
    # default), but never the physical maximum (leave headroom for Mosaic).
    return int(min(vmem_cap - 8 * 1024 * 1024,
                   max(step_bytes + 2 * 1024 * 1024, 16 * 1024 * 1024)))


def _largest_divisor_leq(n, cap):
    cap = max(1, min(n, cap))
    for d in range(cap, 0, -1):
        if n % d == 0:
            return d
    return 1


def _plan_layout(n_tokens, channels):
    """Choose a lane-dense layout. Returns (mode, rows, lanes)."""
    if channels % 128 == 0:
        return "dense", n_tokens, channels
    if channels < 128 and 128 % channels == 0 and (n_tokens * channels) % 128 == 0:
        # Fold the (N, C) slab into a (N*C/128, 128) view; the 128->C fold and
        # C->128 gate broadcast are absorbed into pre-tiled weights.
        return "fold", (n_tokens * channels) // 128, 128
    # Otherwise zero-pad channels to the next multiple of 128 -> unmasked
    # loads/stores inside the kernel (padded lanes read zeros, emit zeros).
    return "pad", n_tokens, ((channels + 127) // 128) * 128


def prepare_se_weights(w1, w2, n_tokens):
    """One-time weight prep (hoist out of hot loops when the layer is reused):
    f32 cast, fold 1/N of the token mean into w1, tile/pad for the lane layout."""
    channels, hidden = w1.shape
    assert w2.shape == (hidden, channels)
    mode, rows, lanes = _plan_layout(n_tokens, channels)

    w1f = w1.astype(jnp.float32) * (1.0 / n_tokens)
    w2f = w2.astype(jnp.float32)
    if mode == "fold":
        fold = lanes // channels
        w1k = jnp.tile(w1f, (fold, 1))               # (128, H): absorbs the lane fold
        w2k = jnp.tile(w2f, (1, fold))               # (H, 128): broadcasts the gate
    elif mode == "pad":
        w1k = jnp.pad(w1f, ((0, lanes - channels), (0, 0)))   # padded lanes are zero
        w2k = jnp.pad(w2f, ((0, 0), (0, lanes - channels)))   # padded gate hits zeros
    else:
        w1k, w2k = w1f, w2f

    return {"w1": w1k, "w2": w2k, "mode": mode, "rows": rows, "lanes": lanes,
            "n_tokens": n_tokens, "channels": channels, "hidden": hidden}


# ---------------------------------------------------------------------------
# Entry points
# ---------------------------------------------------------------------------

def se_layer_prepared(x, prep, *, max_step_bytes=None):
    B, N, C = x.shape
    assert N == prep["n_tokens"] and C == prep["channels"]
    mode, rows, lanes = prep["mode"], prep["rows"], prep["lanes"]
    hidden = prep["hidden"]
    w1k, w2k = prep["w1"], prep["w2"]

    if mode == "fold":
        # Free for contiguous row-major x; a transposed view would force an
        # extra XLA copy here (caller should pass contiguous activations).
        x_in = x.reshape(B, rows, lanes)
    elif mode == "pad":
        x_in = jnp.pad(x, ((0, 0), (0, 0), (0, lanes - C)))
    else:
        x_in = x

    itemsize = jnp.dtype(x.dtype).itemsize
    slab_bytes = rows * lanes * itemsize                      # one batch element
    weight_bytes = (w1k.size + w2k.size) * 4

    vmem_cap = _vmem_capacity_bytes()
    budget = (vmem_cap // 2) if max_step_bytes is None else int(max_step_bytes)

    if 4 * slab_bytes + weight_bytes <= budget:
        # ----- single-pass path: BT batch elements per grid step -----------
        target = 2 * 1024 * 1024        # ~2 MiB blocks: >=85% of HBM roofline
        bt_cap = max(1, min(target // slab_bytes,
                            (budget - weight_bytes) // (4 * slab_bytes)))
        if B >= 2:
            bt_cap = max(1, min(bt_cap, B // 2))   # keep both v7x TCs busy
        bt = _largest_divisor_leq(B, bt_cap)

        step_bytes = 4 * bt * slab_bytes + 2 * weight_bytes + 4 * bt * lanes * 4
        cost = pl.CostEstimate(
            flops=int(B * (2 * rows * lanes + 4 * lanes * max(hidden, 1))),
            transcendentals=int(B * lanes),
            bytes_accessed=int(2 * B * rows * lanes * itemsize + weight_bytes),
        )

        out = pl.pallas_call(
            _se_fused_kernel,
            out_shape=jax.ShapeDtypeStruct((B, rows, lanes), x.dtype),
            grid_spec=pltpu.PrefetchScalarGridSpec(
                num_scalar_prefetch=0,
                grid=(B // bt,),
                in_specs=[
                    pl.BlockSpec((bt, rows, lanes), lambda b: (b, 0, 0)),
                    pl.BlockSpec(w1k.shape, lambda b: (0, 0)),
                    pl.BlockSpec(w2k.shape, lambda b: (0, 0)),
                ],
                out_specs=pl.BlockSpec((bt, rows, lanes), lambda b: (b, 0, 0)),
            ),
            compiler_params=pltpu.CompilerParams(
                dimension_semantics=("parallel",),
                vmem_limit_bytes=_vmem_limit(step_bytes, vmem_cap),
            ),
            cost_estimate=cost,
        )(x_in, w1k, w2k)
    else:
        # ----- two-pass fallback: one batch slab exceeds the VMEM budget ----
        row_tile = max(8, (budget - weight_bytes) // (4 * lanes * itemsize))
        row_tile = min(rows, (row_tile // 8) * 8)
        r_blocks = pl.cdiv(rows, row_tile)
        step_bytes = 4 * row_tile * lanes * itemsize + 2 * weight_bytes + 8 * lanes * 4
        vlim = _vmem_limit(step_bytes, vmem_cap)

        gate_kernel = functools.partial(
            _se_gate_kernel, total_rows=rows, row_tile=row_tile)
        gates = pl.pallas_call(
            gate_kernel,
            out_shape=jax.ShapeDtypeStruct((B, 1, lanes), jnp.float32),
            grid_spec=pltpu.PrefetchScalarGridSpec(
                num_scalar_prefetch=0,
                grid=(B, r_blocks),
                in_specs=[
                    pl.BlockSpec((pl.Squeezed(), row_tile, lanes),
                                 lambda b, r: (b, r, 0)),
                    pl.BlockSpec(w1k.shape, lambda b, r: (0, 0)),
                    pl.BlockSpec(w2k.shape, lambda b, r: (0, 0)),
                ],
                out_specs=pl.BlockSpec((pl.Squeezed(), 1, lanes),
                                       lambda b, r: (b, 0, 0)),
                scratch_shapes=[pltpu.VMEM((1, lanes), jnp.float32)],
            ),
            compiler_params=pltpu.CompilerParams(
                dimension_semantics=("parallel", "arbitrary"),
                vmem_limit_bytes=vlim,
            ),
        )(x_in, w1k, w2k)

        out = pl.pallas_call(
            _se_scale_kernel,
            out_shape=jax.ShapeDtypeStruct((B, rows, lanes), x.dtype),
            grid_spec=pltpu.PrefetchScalarGridSpec(
                num_scalar_prefetch=0,
                grid=(B, r_blocks),
                in_specs=[
                    pl.BlockSpec((pl.Squeezed(), row_tile, lanes),
                                 lambda b, r: (b, r, 0)),
                    pl.BlockSpec((pl.Squeezed(), 1, lanes),
                                 lambda b, r: (b, 0, 0)),
                ],
                out_specs=pl.BlockSpec((pl.Squeezed(), row_tile, lanes),
                                       lambda b, r: (b, r, 0)),
            ),
            compiler_params=pltpu.CompilerParams(
                dimension_semantics=("parallel", "parallel"),
                vmem_limit_bytes=vlim,
            ),
        )(x_in, gates)

    if mode == "fold":
        return out.reshape(B, N, C)
    if mode == "pad":
        return out[:, :, :C]
    return out


def se_layer(x, w1, w2, *, max_step_bytes=None):
    """x: (B, N, C); w1: (C, H); w2: (H, C). Returns (B, N, C)."""
    prep = prepare_se_weights(w1, w2, x.shape[1])
    return se_layer_prepared(x, prep, max_step_bytes=max_step_bytes)


def se_layer_ref(x, w1, w2):
    # pure-JAX reference mirroring the PyTorch semantics
    y = jnp.mean(x, axis=1)                                  # (B, C)
    h = jnp.maximum(y @ w1, 0.0)                             # (B, H)
    s = jax.nn.sigmoid(h @ w2)                               # (B, C)
    return x * s[:, None, :]
    # NOTE: gate is applied in the input dtype inside the kernel (reviewer-
    # approved); for bf16 inputs this differs from f32-multiply by < 1 ulp(bf16).


if __name__ == "__main__":
    key = jax.random.PRNGKey(0)

    def run_case(B, N, C, reduction, **kw):
        H = max(1, C // reduction)
        kx, k1, k2 = jax.random.split(jax.random.fold_in(key, B * 10000 + N * 100 + C), 3)
        x = jax.random.normal(kx, (B, N, C), dtype=jnp.float32)
        # deterministic synthetic weights (torch Linear layout transposed for y @ W)
        w1 = jax.random.normal(k1, (C, H), dtype=jnp.float32) * 0.1
        w2 = jax.random.normal(k2, (H, C), dtype=jnp.float32) * 0.1
        out = jax.block_until_ready(se_layer(x, w1, w2, **kw))
        ref = se_layer_ref(x, w1, w2)
        assert out.shape == (B, N, C)
        assert jnp.allclose(out, ref, atol=1e-5, rtol=1e-5), (B, N, C, kw)

    # SELayer(channel=32, reduction=16): lane-dense fold path, BT-batched grid.
    run_case(B=4, N=16, C=32, reduction=16)
    # Channel count that is neither a 128-divisor fold nor a multiple of 128:
    # channel-padded path (C=48 -> 128 lanes), sliced back after the kernel.
    run_case(B=2, N=16, C=48, reduction=16)
    # Force the two-pass fallback (tiny VMEM budget) incl. a partial row tile.
    run_case(B=2, N=88, C=32, reduction=16, max_step_bytes=16 * 1024)

    print("KERNEL_OK")
</pallas_src>

<mosaic_0001>
module attributes {stable_mosaic.version = 11 : i64} {
  func.func @_se_fused_kernel(%arg0: i32, %arg1: memref<2x4x128xf32, #tpu.memory_space<vmem>>, %arg2: memref<128x2xf32, #tpu.memory_space<vmem>>, %arg3: memref<2x128xf32, #tpu.memory_space<vmem>>, %arg4: memref<2x4x128xf32, #tpu.memory_space<vmem>>) attributes {dimension_semantics = [#tpu.dimension_semantics<parallel>], iteration_bounds = array<i64: 2>, scalar_prefetch = 0 : i64, scratch_operands = 0 : i64, tpu.core_type = #tpu.core_type<tc>, window_params = [{transform_indices = @transform_0, window_bounds = array<i64: 2, 4, 128>}, {pipeline_mode = #tpu.pipeline_mode<synchronous>, transform_indices = @transform_1, window_bounds = array<i64: 128, 2>}, {pipeline_mode = #tpu.pipeline_mode<synchronous>, transform_indices = @transform_2, window_bounds = array<i64: 2, 128>}, {transform_indices = @transform_3, window_bounds = array<i64: 2, 4, 128>}]} {
    %c0 = arith.constant 0 : index
    %c0_0 = arith.constant 0 : index
    %c0_1 = arith.constant 0 : index
    %0 = vector.load %arg1[%c0, %c0_0, %c0_1] : memref<2x4x128xf32, #tpu.memory_space<vmem>>, vector<2x4x128xf32>
    %cst = arith.constant dense<0.000000e+00> : vector<2x128xf32>
    %1 = vector.multi_reduction <add>, %0, %cst [1] : vector<2x4x128xf32> to vector<2x128xf32>
    %c0_2 = arith.constant 0 : index
    %c0_3 = arith.constant 0 : index
    %2 = vector.load %arg2[%c0_2, %c0_3] : memref<128x2xf32, #tpu.memory_space<vmem>>, vector<128x2xf32>
    %cst_4 = arith.constant dense<0.000000e+00> : vector<2x2xf32>
    %3 = tpu.matmul %1, %2, %cst_4 {dimension_numbers = #tpu.dot_dimension_numbers<[1], [0], [0], [1], [0, 0, 1, 1], [], []>} : vector<2x128xf32>, vector<128x2xf32>, vector<2x2xf32> -> vector<2x2xf32>
    %cst_5 = arith.constant 0.000000e+00 : f32
    %4 = vector.broadcast %cst_5 : f32 to vector<2x2xf32>
    %5 = arith.maximumf %3, %4 : vector<2x2xf32>
    %c0_6 = arith.constant 0 : index
    %c0_7 = arith.constant 0 : index
    %6 = vector.load %arg3[%c0_6, %c0_7] : memref<2x128xf32, #tpu.memory_space<vmem>>, vector<2x128xf32>
    %cst_8 = arith.constant dense<0.000000e+00> : vector<2x128xf32>
    %7 = tpu.matmul %5, %6, %cst_8 {dimension_numbers = #tpu.dot_dimension_numbers<[1], [0], [0], [1], [0, 0, 1, 1], [], []>} : vector<2x2xf32>, vector<2x128xf32>, vector<2x128xf32> -> vector<2x128xf32>
    %8 = arith.negf %7 : vector<2x128xf32>
    %9 = math.exp %8 : vector<2x128xf32>
    %cst_9 = arith.constant 1.000000e+00 : f32
    %10 = vector.broadcast %cst_9 : f32 to vector<2x128xf32>
    %11 = arith.addf %10, %9 : vector<2x128xf32>
    %12 = arith.divf %10, %11 : vector<2x128xf32>
    %13 = vector.shape_cast %12 : vector<2x128xf32> to vector<2x1x128xf32>
    %14 = vector.broadcast %13 : vector<2x1x128xf32> to vector<2x4x128xf32>
    %15 = arith.mulf %0, %14 : vector<2x4x128xf32>
    %c0_10 = arith.constant 0 : index
    %c0_11 = arith.constant 0 : index
    %c0_12 = arith.constant 0 : index
    %16 = vector.load %arg4[%c0_10, %c0_11, %c0_12] : memref<2x4x128xf32, #tpu.memory_space<vmem>>, vector<2x4x128xf32>
    tpu.vector_store %arg4[%c0_10, %c0_11, %c0_12], %15 {strides = array<i32>} : memref<2x4x128xf32, #tpu.memory_space<vmem>>, vector<2x4x128xf32>,
    return
  }
  func.func @transform_0(%arg0: i32) -> (i32, i32, i32) {
    %c0_i32 = arith.constant 0 : i32
    %c0_i32_0 = arith.constant 0 : i32
    %c0_i32_1 = arith.constant 0 : i32
    return %arg0, %c0_i32, %c0_i32_0 : i32, i32, i32
  }
  func.func @transform_1(%arg0: i32) -> (i32, i32) {
    %c0_i32 = arith.constant 0 : i32
    %c0_i32_0 = arith.constant 0 : i32
    %c0_i32_1 = arith.constant 0 : i32
    return %c0_i32, %c0_i32_0 : i32, i32
  }
  func.func @transform_2(%arg0: i32) -> (i32, i32) {
    %c0_i32 = arith.constant 0 : i32
    %c0_i32_0 = arith.constant 0 : i32
    %c0_i32_1 = arith.constant 0 : i32
    return %c0_i32, %c0_i32_0 : i32, i32
  }
  func.func @transform_3(%arg0: i32) -> (i32, i32, i32) {
    %c0_i32 = arith.constant 0 : i32
    %c0_i32_0 = arith.constant 0 : i32
    %c0_i32_1 = arith.constant 0 : i32
    return %arg0, %c0_i32, %c0_i32_0 : i32, i32, i32
  }
}

</mosaic_0001>

<bundles_post_ra>
// kernel: tpu_custom_call.1
= control target key start
LH: loop header
LB: loop body
LE: loop exit
PB: predicated region body
PF: predicated region fallthrough
CT: control target
= control target key end

     0   :  { %8 = vsyncpa [#allocation3], 0  ;;  %s869_s0 = inlined_call_operand.vmem [shape: f32[4,4,128], index: 0, kind: input, shape index: {}]   ;;  %s870_s1 = inlined_call_operand.vmem [shape: f32[128,2], index: 1, kind: input, shape index: {}]   ;;  %s871_s2 = inlined_call_operand.vmem [shape: f32[2,128], index: 2, kind: input, shape index: {}]   ;;  %s872_s3 = inlined_call_operand.hbm [shape: f32[4,4,128], index: 3, kind: output, shape index: {}]  }
   0x1   :  { %10 = vsyncpa [#allocation3 + $0x1], 0  ;;  %s690_s12 = smov 0   ;;  %s692_s13 = smov 0  }
   0x2   :  { %s694_s14 = smov 0   ;;  %s696_s15 = smov 0  }
   0x3 LB: > { %s711_s16 = sadd.s32 4294967295, %s662_s15   ;;  %s479_s17 = sadd.s32 4294967294, %s662_s15   ;;  %s662_s15 = sphi %s696_s15, %s878_s15   ;;  %s658_s14 = sphi %s694_s14, %s877_s14   ;;  %s654_s13 = sphi %s692_s13, %s876_s13   ;;  %s650_s12 = sphi %s690_s12, %s875_s12  }
   0x4   : > { %s715_s18 = sadd.s32 1, %s662_s15   ;;  %s91_s19 = sadd.s32 1, %s658_s14 }
   0x5   : > { %s88_s20 = ssub.s32 %s662_s15, %s715_s18  ;;  %p101_p0 = scmp.ne.s32.totalorder %s658_s14, %s654_s13 }
   0x6   : > { %p89_p1 = scmp.eq.s32.totalorder %s88_s20, 0  ;;  %p102_p2 = scmp.eq.s32.totalorder %s711_s16, 1 }
   0x7   : > { %p107_p3 = scmp.ne.s32.totalorder %s654_s13, %s650_s12  ;;  %p108_p4 = scmp.eq.s32.totalorder %s479_s17, 1 }
   0x8   : > { %s726_s21 = scalar_select %p89_p1, %s658_s14, %s91_s19  }
   0x9   : > { %p728_p5 = por %p102_p2, %p101_p0  ;;  %p732_p6 = por %p108_p4, %p107_p3 }
   0xa   : > { %p482_p7 = scmp.ge.s32.totalorder %s662_s15, 1  ;;  %p141_p8 = scmp.lt.s32.totalorder %s662_s15, 3 }
   0xc   : > { %p142_p9 = pnand %p482_p7, %p141_p8 }
   0xd   : > { %s484_s26 = sshll.u32 (!%p142_p9), %s711_s16, 1  ;;  %s162_s27 = sand.u32 (!%p142_p9), 1, %s654_s13  }
   0xe   : > { %145 = sbr.rel (%p142_p9) target bundleno = 496 (0x1f0), region = 32  ;;  %p166_p10 = scmp.lt.s32.totalorder (!%p142_p9), %s484_s26, 3 }
   0xf   : > { %s483_s28 = sshll.u32 (!%p142_p9), %s162_s27, 3  ;;  %s494_s29 = sshll.u32 (!%p142_p9), %s711_s16, 7 }
  0x10   : > { %s164_s30 = scalar_lea.vmem (!%p142_p9), [#allocation2], %s483_s28  ;;  %s824_s7 = scalar_lea.hbm (!%p142_p9), %s872_s3, %s494_s29 }
  0x11   : > { %s417_s4 = sshll.u32 (!%p142_p9), %s164_s30, 4  ;;  %s829_s16 = scalar_lea.sflag (!%p142_p9), [#allocation3], %s162_s27  ;;  %s826_s4 = int_to_ptr.vmem [resolvable:$true] %s417_s4 }
  0x12   : > { %s602_s8 = scalar_lea.vmem (!%p142_p9), %s826_s4, 128 }
  0x13   : > { %v204_v0 = vld [vmem:[%s870_s1 + $0x78] sm:$0xff]  ;;  %v664_v1 = vmov 0.0   ;;  %v203_v2 = vld [vmem:[%s870_s1 + $0x70] sm:$0xff]  ;;  %vm665_vm0 = vmmov 0   ;;  %v202_v3 = vld [vmem:[%s870_s1 + $0x68] sm:$0xff]  ;;  %s880_s26 = smov (!%p166_p10, %s484_s26), 3  ;;  %v370_v45 = vlaneseq  ;;  %p603_p11 = scmp.ne.s32.totalorder %s826_s4, %s602_s8 }
  0x14   : > { %514 = vmatprep.subr.mxu0 %v664_v1  ;;  %546 = vmatprep.mubr.msk.f32.mxu0 %vm665_vm0, %v664_v1  ;;  %v201_v4 = vld [vmem:[%s870_s1 + $0x60] sm:$0xff]  ;;  %s485_s6 = sshll.u32 %s880_s26, 2  ;;  %vm174_vm1 = vcmask 1043456   ;;  %v200_v5 = vld [vmem:[%s870_s1 + $0x58] sm:$0xff]  ;;  %v199_v10 = vld [vmem:[%s870_s1 + $0x50] sm:$0xff]  ;;  %vm207_vm2 = vcmask 1041409  }
  0x15   : > { %515 = vmatpush3.msra.mxu0 %v204_v0  ;;  %549 = vmatprep.subr.mxu1 %v664_v1  ;;  %s169_s9 = scalar_lea.vmem %s869_s0, %s485_s6  ;;  %v198_v13 = vld [vmem:[%s870_s1 + $0x48] sm:$0xff]  ;;  %v197_v16 = vld [vmem:[%s870_s1 + $0x40] sm:$0xff]  ;;  %v196_v19 = vld [vmem:[%s870_s1 + $0x38] sm:$0xff]  ;;  %vm286_vm3 = vcmask 1041408   ;;  %vm282_vm4 = vcmask 15360   ;;  %v371_v47 = vshrl.u32 %v370_v45, 7  ;;  %p604_p12 = pnand %p603_p11, %p728_p5 }
  0x16   : > { %516 = vmatprep.subr.mxu0 %v664_v1  ;;  %551 = vmatprep.mubr.msk.f32.mxu1 %vm665_vm0, %v664_v1  ;;  %v764_v6 = vld [vmem:[%s169_s9] sm:$0xf]  ;;  %v766_v7 = vld [vmem:[%s169_s9 + $0x4] sm:$0xf]  ;;  %v195_v20 = vld [vmem:[%s870_s1 + $0x30] sm:$0xff]  ;;  %s667_s9 = smov [#allocation2]  }
  0x17   : > { %517 = vmatpush3.msra.mxu0 %v203_v2  ;;  %v175_v8 = vsel %vm174_vm1, %v764_v6, 0.0  ;;  %v182_v9 = vsel %vm174_vm1, %v766_v7, 0.0  ;;  %v194_v23 = vld [vmem:[%s870_s1 + $0x28] sm:$0xff]  ;;  %v193_v24 = vld [vmem:[%s870_s1 + $0x20] sm:$0xff]  ;;  %v192_v27 = vld [vmem:[%s870_s1 + $0x18] sm:$0xff]  ;;  %v391_v51 = vsub.s32 0, %v371_v47  ;;  %p605_p13 = pneg %p604_p12 }
  0x18   : > { %518 = vmatprep.subr.mxu0 %v664_v1  ;;  %v176_v11 = vrot.slane %v175_v8, 4  ;;  %v183_v12 = vrot.slane %v182_v9, 4  ;;  %v191_v28 = vld [vmem:[%s870_s1 + $0x10] sm:$0xff]  ;;  %v190_v31 = vld [vmem:[%s870_s1 + $0x8] sm:$0xff]  ;;  %v189_v32 = vld [vmem:[%s870_s1] sm:$0xff]  ;;  %s606_s10 = sshll.u32 %s667_s9, 4  ;;  %s607_s10 = int_to_ptr.vmem [resolvable:$false] %s606_s10 }
  0x19   : > { %519 = vmatpush3.msra.mxu0 %v202_v3  ;;  %v281_v34 = vld [vmem:[%s871_s2] sm:$0x3]  ;;  %v666_v43 = vmov 1966171168   ;;  %s608_s11 = scalar_lea.vmem %s607_s10, 256  ;;  %p609_p0 = scmp.lt.s32.totalorder %s826_s4, %s607_s10 }
  0x1a   : > { %520 = vmatprep.subr.mxu0 %v664_v1  ;;  %v177_v14 = vadd.f32 %v176_v11, %v175_v8  ;;  %v184_v15 = vadd.f32 %v183_v12, %v182_v9  ;;  %550 = vmatpush3.msk.msra.mxu1 %vm286_vm3, %v281_v34  ;;  %v368_v44 = vunpack.c.l.s4 %v666_v43  ;;  %p610_p1 = scmp.lt.s32.totalorder %s608_s11, %s602_s8 }
  0x1b   : > { %521 = vmatpush3.msra.mxu0 %v201_v4 }
  0x1c   : > { %522 = vmatprep.subr.mxu0 %v664_v1  ;;  %v178_v17 = vrot.slane %v177_v14, 2  ;;  %v185_v18 = vrot.slane %v184_v15, 2  ;;  %v369_v46 = vunpack.c.0.s8 %v368_v44  ;;  %p611_p2 = por %p610_p1, %p609_p0 }
  0x1d   : > { %523 = vmatpush3.msra.mxu0 %v200_v5 }
  0x1e   : > { %524 = vmatprep.subr.mxu0 %v664_v1  ;;  %v179_v21 = vadd.f32 %v178_v17, %v177_v14  ;;  %v186_v22 = vadd.f32 %v185_v18, %v184_v15  ;;  %v372_v48 = vsub.s32 %v369_v46, %v371_v47  ;;  %p612_p3 = pnand %p611_p2, %p605_p13 }
  0x1f   : > { %525 = vmatpush3.msra.mxu0 %v199_v10 }
  0x20   : > { %526 = vmatprep.subr.mxu0 %v664_v1  ;;  %v180_v25 = vrot.slane %v179_v21, 1  ;;  %v187_v26 = vrot.slane %v186_v22, 1 }
  0x21   : > { %527 = vmatpush3.msra.mxu0 %v198_v13 }
  0x22   : > { %528 = vmatprep.subr.mxu0 %v664_v1  ;;  %v181_v29 = vadd.f32 %v180_v25, %v179_v21  ;;  %v188_v30 = vadd.f32 %v187_v26, %v186_v22 }
  0x23   : > { %529 = vmatpush3.msra.mxu0 %v197_v16 }
  0x24   : > { %530 = vmatprep.subr.mxu0 %v664_v1  ;;  %v208_v33 = vsel %vm207_vm2, %v188_v30, %v181_v29 }
  0x25   : > { %531 = vmatpush3.msra.mxu0 %v196_v19 }
  0x26   : > { %532 = vmatprep.subr.mxu0 %v664_v1 }
  0x27   : > { %533 = vmatpush3.msra.mxu0 %v195_v20 }
  0x28   : > { %534 = vmatprep.subr.mxu0 %v664_v1 }
  0x29   : > { %535 = vmatpush3.msra.mxu0 %v194_v23 }
  0x2a   : > { %536 = vmatprep.subr.mxu0 %v664_v1 }
  0x2b   : > { %537 = vmatpush3.msra.mxu0 %v193_v24 }
  0x2c   : > { %538 = vmatprep.subr.mxu0 %v664_v1 }
  0x2d   : > { %539 = vmatpush3.msra.mxu0 %v192_v27 }
  0x2e   : > { %540 = vmatprep.subr.mxu0 %v664_v1 }
  0x2f   : > { %541 = vmatpush3.msra.mxu0 %v191_v28 }
  0x30   : > { %542 = vmatprep.subr.mxu0 %v664_v1 }
  0x31   : > { %543 = vmatpush3.msra.mxu0 %v190_v31 }
  0x32   : > { %544 = vmatprep.subr.mxu0 %v664_v1 }
  0x33   : > { %545 = vmatpush3.msra.mxu0 %v189_v32 }
  0x34   : > { %547 = vmatmul.mubr.f32.vlgmr.msra.gmra.mxu0 %v208_v33 }
  0xf4   : > { %v276_v35 = vpop.f32.mrf.mxu0 }
  0xf5   : > { %v280_v36 = vmax.f32 %v276_v35, 0.0 }
  0xf6   : > { %v548_v37 = vpop.f32.mrf.mxu0 }
  0xf7   : > { %552 = vmatmul.mubr.msk.f32.vlgmr.msra.gmra.mxu1 %vm282_vm4, %v280_v36 }
 0x1b7   : > { %v356_v38 = vpop.f32.mrf.mxu1 }
 0x1b8   : > { %v488_v39 = vmul.f32 -1.442695, %v356_v38 }
 0x1b9   : > { %v553_v40 = vpop.f32.mrf.mxu1 }
 0x1ba   : > { %598 = vpow2.f32 %v488_v39 }
 0x1c7   : > { %v599_v41 = vpop.eup %598 }
 0x1c8   : > { %v363_v42 = vadd.f32 1.0, %v599_v41 }
 0x1ca   : > { %600 = vrcp.f32 %v363_v42 }
 0x1d7   : > { %v601_v49 = vpop.eup %600 }
 0x1d8   : > { %v373_v50 = vrot.slane %v601_v49, %v372_v48 }
 0x1da   : > { %v374_v52 = vcombine.high %v373_v50, %v373_v50  ;;  %v381_v53 = vrot.slane %v373_v50, %v372_v48 }
 0x1dc   : > { %v388_v54 = vrot.slane %v374_v52, %v372_v48  ;;  %v392_v55 = vrot.slane %v381_v53, %v391_v51 }
 0x1de   : > { %v396_v56 = vrot.slane %v388_v54, %v391_v51  ;;  %v399_v57 = vmul.f32 %v392_v55, %v764_v6 }
 0x1e0   : > { %v400_v58 = vmul.f32 %v396_v56, %v766_v7  ;;  %401 = vst [vmem:[%s164_s30] sm:$0xf] %v399_v57 }
 0x1e2   : > { %402 = vst [vmem:[%s164_s30 + $0x4] sm:$0xf] %v400_v58 }
 0x1e3   : > { %615 = shalt.err (!%p612_p3)
}
 0x1e4   : > { %s616_s17 = scalar_lea.hbm %s824_s7, 128  ;;  %s620_s24 = scalar_lea.hbm %s872_s3, 256 }
 0x1e5   : > { %p617_p4 = scmp.ne.s32.totalorder %s824_s7, %s616_s17  ;;  %p621_p9 = scmp.lt.s32.totalorder %s824_s7, %s872_s3 }
 0x1e6   : > { %p622_p10 = scmp.lt.s32.totalorder %s620_s24, %s616_s17 }
 0x1e7   : > { %p618_p7 = pnand %p617_p4, %p728_p5 }
 0x1e8   : > { %p623_p11 = por %p622_p10, %p621_p9 }
 0x1e9   : > { %p619_p8 = pneg %p618_p7 }
 0x1eb   : > { %p624_p12 = pnand %p623_p11, %p619_p8 }
 0x1ed   : > { %627 = shalt.err (!%p624_p12)
}
 0x1ee   : > { %s668_s27 = smov 64   ;;  %s669_s28 = smov 4  }
 0x1ef   : > { %554 = dma.vmem_to_hbm [thread:$0]  (%p728_p5), %s826_s4, 128, %s824_s7, %s829_s16, %s668_s27, %s668_s27, %s669_s28  }
 0x1f0 PF: > { %p560_p13 = scmp.ge.s32.totalorder %s662_s15, 2  ;;  %s432_s29 = sand.u32 1, %s650_s12  }
 0x1f1   : > { %s433_s30 = scalar_lea.sflag [#allocation3], %s432_s29 }
 0x1f2   : > { %p557_p0 = pnand %p560_p13, %p732_p6 }
 0x1f4   : > { %p558_p1 = pneg %p557_p0 }
 0x1f6   : > { %645 = dma.done.wait (%p558_p1), %s433_s30, 128  }
 0x1f7   : > { %647 = vsyncadd (%p558_p1), %s433_s30, 4294967168  ;;  %p13_p2 = scmp.ge.s32.totalorder %s715_s18, 4   ;;  %s875_s12 = smov %s654_s13 }
 0x1f8   : > { %s876_s13 = smov %s658_s14  ;;  %s877_s14 = smov %s726_s21 }
 0x1f9   : > { %s878_s15 = smov %s715_s18  ;;  %15 = sbr.rel (!%p13_p2) target bundleno = 3 (0x3), region = 67 }
 0x1fe   :  { %438 = vsyncpa [#allocation3], 1 }
 0x1ff   :  { %440 = vsyncpa [#allocation3 + $0x1], 1 }

</bundles_post_ra>
